<compile_context>
chip_gen: v7x
topology: tpu7x:2x2x1
jax: 0.10.0
libtpu: 0.0.40
codegen_flags: <defaults>
</compile_context>

<pallas_src>
import jax
import jax.numpy as jnp
from jax.experimental import pallas as pl
from jax.experimental.pallas import tpu as pltpu


def _decoder_hbm_copy_kernel(x_hbm, o_hbm, sem):
    # Base-class "forward" defines no transformation; emit a single direct
    # HBM->HBM DMA copy (no VMEM staging, no vreg traffic).
    cp = pltpu.make_async_copy(x_hbm, o_hbm, sem)
    cp.start()
    cp.wait()


def decoder_forward(X, state):
    """Concrete stand-in for Decoder.forward(X, state).

    X:     array of any shape/dtype — passed through unchanged via one
           HBM->HBM DMA inside a Pallas kernel.
    state: arbitrary pytree — returned unchanged (the base class defines no
           state-update rule).
    """
    nbytes = X.size * X.dtype.itemsize
    out = pl.pallas_call(
        _decoder_hbm_copy_kernel,
        out_shape=jax.ShapeDtypeStruct(X.shape, X.dtype),
        in_specs=[pl.BlockSpec(memory_space=pl.ANY)],
        out_specs=pl.BlockSpec(memory_space=pl.ANY),
        scratch_shapes=[pltpu.SemaphoreType.DMA],
        cost_estimate=pl.CostEstimate(
            flops=0, transcendentals=0, bytes_accessed=2 * nbytes
        ),
    )(X)
    return out, state


def decoder_init_state(enc_output, *args):
    # Base class raises NotImplementedError; the natural concrete default is
    # to hand the encoder output through as the initial state.
    return enc_output


if __name__ == "__main__":
    key = jax.random.PRNGKey(0)
    k1, k2, k3 = jax.random.split(key, 3)

    # Small shapes consistent with a seq2seq decoder interface.
    B, S, H = 2, 8, 32
    X = jax.random.normal(k1, (B, S, H), dtype=jnp.float32)
    enc_output = jax.random.normal(k2, (B, S, H), dtype=jnp.float32)

    state = decoder_init_state(enc_output)
    out, new_state = decoder_forward(X, state)
    out = jax.block_until_ready(out)

    assert out.shape == X.shape and out.dtype == X.dtype
    assert bool(jnp.array_equal(out, X))
    assert bool(jnp.array_equal(new_state, enc_output))

    # Non-(8,128)-aligned, odd-shaped input: the DMA path handles any shape
    # with no VMEM footprint (no fallback branch, no OOM cliff).
    X_odd = jax.random.normal(k3, (3, 5, 7), dtype=jnp.bfloat16)
    out_odd, _ = decoder_forward(X_odd, state)
    out_odd = jax.block_until_ready(out_odd)
    assert bool(jnp.array_equal(out_odd, X_odd))

    print("KERNEL_OK")
</pallas_src>

<mosaic_0001>
module attributes {stable_mosaic.version = 11 : i64} {
  func.func @_decoder_hbm_copy_kernel(%arg0: memref<2x8x32xf32, #tpu.memory_space<any>>, %arg1: memref<2x8x32xf32, #tpu.memory_space<any>>, %arg2: memref<!tpu.dma_semaphore, #tpu.memory_space<semaphore_mem>>) attributes {dimension_semantics = [], scalar_prefetch = 0 : i64, scratch_operands = 1 : i64, tpu.core_type = #tpu.core_type<tc>} {
    tpu.enqueue_dma source(%arg0 : memref<2x8x32xf32, #tpu.memory_space<any>>) target(%arg1 : memref<2x8x32xf32, #tpu.memory_space<any>>) target_semaphore(%arg2 : memref<!tpu.dma_semaphore, #tpu.memory_space<semaphore_mem>>)
    tpu.wait_dma2 semaphore(%arg2 : memref<!tpu.dma_semaphore, #tpu.memory_space<semaphore_mem>>) src(%arg0 : memref<2x8x32xf32, #tpu.memory_space<any>>) dst(%arg1 : memref<2x8x32xf32, #tpu.memory_space<any>>)
    return
  }
}

</mosaic_0001>

<bundles_post_ra>
// kernel: tpu_custom_call.1
= control target key start
LH: loop header
LB: loop body
LE: loop exit
PB: predicated region body
PF: predicated region fallthrough
CT: control target
= control target key end

     0   :  { %s35_s6 = smov [#allocation2]   ;;  %s36_s7 = smov [#allocation3]   ;;  %s54_s0 = inlined_call_operand.hbm [shape: f32[2,8,32], index: 0, kind: input, shape index: {}]   ;;  %s55_s1 = inlined_call_operand.hbm [shape: f32[2,8,32], index: 1, kind: output, shape index: {}]  }
   0x1   :  { %s37_s8 = smov 0  }
   0x2   :  { %18 = dma.general %s54_s0, 256, %s55_s1, %s35_s6, %s36_s7, [#allocation4], %s37_s8, 0  }
   0x3   :  { %33 = dma.done.wait [#allocation2], 256 }
   0x4   :  { %34 = vsyncadd [#allocation2], 4294967040 }
   0x5   :  { %23 = vsyncmov [#allocation2] }
   0x8   :  { %s24_s13 = vpop.sfrf %23 }
   0x9   :  { %p29_p0 = scmp.ne.s32.totalorder %s24_s13, 0 }
   0xb   :  { %28 = shalt.err (%p29_p0)  }

</bundles_post_ra>
